<compile_context>
chip_gen: v6e
topology: v6e:2x2x1
jax: 0.10.0
libtpu: 0.0.40
codegen_flags: <defaults>
</compile_context>

<pallas_src>
import functools

import jax
import jax.numpy as jnp
from jax.experimental import pallas as pl
from jax.experimental.pallas import tpu as pltpu

LANE = 128


def _round_up(n, m):
    return ((n + m - 1) // m) * m


def _pad_to(a, shape):
    pads = [(0, t - s) for s, t in zip(a.shape, shape)]
    if all(p == (0, 0) for p in pads):
        return a
    return jnp.pad(a, pads)


def _mlp_kernel(x_ref, w1_ref, b1_ref, w2_ref, b2_ref, o_ref, acc_ref, *, h_chunk):
    """One (batch-tile, H-block) grid step of relu(x @ w1 + b1) @ w2 + b2.

    Axis 1 of the grid streams (Fp, tk_h) / (tk_h, Op) weight blocks and
    accumulates into an f32 VMEM scratch tile.  The tile is initialized from
    b2 at k == 0 (saves the separate bias add) and stored at the last k step.
    """
    k = pl.program_id(1)

    @pl.when(k == 0)
    def _init():
        acc_ref[...] = jnp.broadcast_to(
            b2_ref[...].astype(jnp.float32), acc_ref.shape)

    # Cast the LHS once so both matmuls run the fast (bf16-in / f32-acc) MXU
    # path when the weights are bf16; for f32 weights this is a no-op.
    x = x_ref[...].astype(w1_ref.dtype)

    tk_h = w1_ref.shape[1]
    n_chunks = tk_h // h_chunk

    def chunk(lo):
        h = jnp.dot(x, w1_ref[:, pl.ds(lo, h_chunk)],
                    preferred_element_type=jnp.float32)
        h = jnp.maximum(h + b1_ref[:, pl.ds(lo, h_chunk)], 0.0)
        acc_ref[...] += jnp.dot(h.astype(w2_ref.dtype),
                                w2_ref[pl.ds(lo, h_chunk), :],
                                preferred_element_type=jnp.float32)

    if n_chunks <= 8:
        # Short static loop -> unroll at trace time (LLO scheduler visibility).
        for c in range(n_chunks):
            chunk(c * h_chunk)
    else:
        # Long loop -> real scf.for to bound live ranges / code size.
        @pl.loop(0, n_chunks)
        def _(c):
            chunk(pl.multiple_of(c * h_chunk, LANE))

    @pl.when(k == pl.num_programs(1) - 1)
    def _store():
        o_ref[...] = acc_ref[...].astype(o_ref.dtype)


def _default_tm():
    """256 for 256x256-MXU chips (v6e/v7x); 128 for older 128x128-MXU chips."""
    try:
        kind = jax.devices()[0].device_kind.lower()
    except Exception:  # pragma: no cover - defensive
        kind = ""
    for old in ("v2", "v3", "v4", "v5"):
        if old in kind:
            return 128
    return 256


def _vmem_budget_bytes():
    """Per-chip VMEM budget: physical capacity minus ~8 MiB Mosaic headroom."""
    cap = None
    try:
        cap = getattr(pltpu.get_tpu_info(), "vmem_capacity_bytes", None)
    except Exception:  # pragma: no cover - defensive
        cap = None
    if not cap:
        cap = 64 << 20  # conservative fallback: v7x per-TensorCore VMEM
    return max(16 << 20, int(cap) - (8 << 20))


def _choose_tk_h(Fp, Hp, Op, tm, x_isz, w_isz, budget):
    """Largest H block (multiple of 128, dividing Hp) whose buffers fit VMEM."""
    # Fixed per-step VMEM: double-buffered x/out tiles + f32 accumulator + b2.
    fixed = 2 * tm * Fp * x_isz + 2 * tm * Op * x_isz + tm * Op * 4 + 2 * Op * w_isz
    tk = Hp
    while True:
        n_k = Hp // tk
        bufs = 1 if n_k == 1 else 2  # resident => single-buffered weights
        w_bytes = bufs * (Fp * tk + tk + tk * Op) * w_isz
        if fixed + w_bytes <= budget or tk == LANE:
            return tk
        nxt = tk // 2
        while nxt > LANE and (nxt % LANE != 0 or Hp % nxt != 0):
            nxt -= LANE
        nxt = max(nxt, LANE)
        if Hp % nxt != 0:
            nxt = LANE  # Hp is always a multiple of 128
        if nxt == tk:
            return tk
        tk = nxt


def _choose_h_chunk(tk_h, tm, Op):
    """Bound live f32 intermediates (h tile + acc) to stay off the spill path."""
    for hc in (512, 256, 128):
        if tk_h % hc == 0 and tm * (hc + Op) * 4 <= (192 << 10):
            return hc
    return LANE


def feature_to_output(x, w1, b1, w2, b2, *, tm=None):
    """Fused MLP: relu(x @ w1 + b1) @ w2 + b2.

    x : (B, F), w1 : (F, H), b1 : (H,), w2 : (H, O), b2 : (O,). Returns (B, O).
    """
    B, F = x.shape
    H = w1.shape[1]
    O = w2.shape[1]

    Fp = _round_up(max(F, LANE), LANE)
    Hp = _round_up(max(H, LANE), LANE)
    Op = _round_up(max(O, LANE), LANE)
    if tm is None:
        tm = _default_tm()
    tm = min(tm, _round_up(max(B, 8), 8))
    Bp = _round_up(B, tm)

    x_isz = jnp.dtype(x.dtype).itemsize
    w_isz = jnp.dtype(w1.dtype).itemsize

    budget = _vmem_budget_bytes()
    tk_h = _choose_tk_h(Fp, Hp, Op, tm, x_isz, w_isz, budget)
    h_chunk = _choose_h_chunk(tk_h, tm, Op)
    nb = Bp // tm
    nk = Hp // tk_h
    weights_resident = (nk == 1)

    # Zero padding is exact for this MLP: padded F cols of x / rows of w1
    # contribute 0; padded hidden units have zero weight+bias (relu(0)=0 feeds
    # zero w2 rows); padded output cols / batch rows are sliced off.
    x_p = _pad_to(x, (Bp, Fp))
    w1_p = _pad_to(w1, (Fp, Hp))
    b1_p = _pad_to(b1.reshape(1, H), (1, Hp))
    w2_p = _pad_to(w2, (Hp, Op))
    b2_p = _pad_to(b2.reshape(1, O), (1, Op))

    flops = 2 * Bp * (Fp * Hp + Hp * Op)
    bytes_accessed = (Bp * Fp * x_isz + Fp * Hp * w_isz + Hp * w_isz
                      + Hp * Op * w_isz + Op * w_isz + Bp * Op * x_isz)
    cost = pl.CostEstimate(flops=flops, transcendentals=0,
                           bytes_accessed=bytes_accessed)

    def build(single_buffer_resident):
        def spec(shape, index_map, resident=False):
            # Constant-index operands are never re-fetched: a single buffer
            # halves their VMEM footprint vs. the default double buffering.
            if single_buffer_resident and resident and hasattr(pl, "Buffered"):
                try:
                    return pl.BlockSpec(shape, index_map,
                                        pipeline_mode=pl.Buffered(1))
                except TypeError:
                    pass
            return pl.BlockSpec(shape, index_map)

        return pl.pallas_call(
            functools.partial(_mlp_kernel, h_chunk=h_chunk),
            out_shape=jax.ShapeDtypeStruct((Bp, Op), x.dtype),
            grid=(nb, nk),
            in_specs=[
                spec((tm, Fp), lambda i, k: (i, 0)),                       # x
                spec((Fp, tk_h), lambda i, k: (0, k), weights_resident),   # w1
                spec((1, tk_h), lambda i, k: (0, k), weights_resident),    # b1
                spec((tk_h, Op), lambda i, k: (k, 0), weights_resident),   # w2
                spec((1, Op), lambda i, k: (0, 0), True),                  # b2
            ],
            out_specs=pl.BlockSpec((tm, Op), lambda i, k: (i, 0)),
            scratch_shapes=[pltpu.VMEM((tm, Op), jnp.float32)],
            compiler_params=pltpu.CompilerParams(
                dimension_semantics=("parallel", "arbitrary"),
                vmem_limit_bytes=int(budget)),
            cost_estimate=cost,
        )

    try:
        out_p = build(True)(x_p, w1_p, b1_p, w2_p, b2_p)
    except Exception:
        # Fall back to default (double) buffering if single-buffered
        # pipeline_mode is not supported by this JAX / Mosaic version.
        out_p = build(False)(x_p, w1_p, b1_p, w2_p, b2_p)

    return out_p[:B, :O]


def init_params(key, num_features, output_size, dtype=jnp.float32):
    """Deterministic init mirroring nn.Linear default (U[-1/sqrt(fan_in), 1/sqrt(fan_in)])."""
    hidden = num_features * 2
    k1, k2, k3, k4 = jax.random.split(key, 4)
    bound1 = 1.0 / jnp.sqrt(num_features)
    bound2 = 1.0 / jnp.sqrt(hidden)
    w1 = jax.random.uniform(k1, (num_features, hidden), dtype,
                            minval=-bound1, maxval=bound1)
    b1 = jax.random.uniform(k2, (hidden,), dtype, minval=-bound1, maxval=bound1)
    w2 = jax.random.uniform(k3, (hidden, output_size), dtype,
                            minval=-bound2, maxval=bound2)
    b2 = jax.random.uniform(k4, (output_size,), dtype,
                            minval=-bound2, maxval=bound2)
    return w1, b1, w2, b2


if __name__ == "__main__":
    key = jax.random.PRNGKey(0)
    batch = 8
    num_features = 32
    output_size = 16

    kx, kp = jax.random.split(key)
    x = jax.random.normal(kx, (batch, num_features), jnp.float32)
    w1, b1, w2, b2 = init_params(kp, num_features, output_size)

    out = feature_to_output(x, w1, b1, w2, b2)
    out = jax.block_until_ready(out)

    # Pure-JAX reference check.
    ref = jnp.maximum(x @ w1 + b1, 0.0) @ w2 + b2
    assert out.shape == (batch, output_size)
    assert jnp.allclose(out, ref, atol=1e-5, rtol=1e-5)

    print("KERNEL_OK")
</pallas_src>

<mosaic_0001>
module attributes {stable_mosaic.version = 11 : i64} {
  func.func @_mlp_kernel(%arg0: i32, %arg1: i32, %arg2: memref<8x128xf32, #tpu.memory_space<vmem>>, %arg3: memref<128x128xf32, #tpu.memory_space<vmem>>, %arg4: memref<1x128xf32, #tpu.memory_space<vmem>>, %arg5: memref<128x128xf32, #tpu.memory_space<vmem>>, %arg6: memref<1x128xf32, #tpu.memory_space<vmem>>, %arg7: memref<8x128xf32, #tpu.memory_space<vmem>>, %arg8: memref<8x128xf32, #tpu.memory_space<vmem>>) attributes {dimension_semantics = [#tpu.dimension_semantics<parallel>, #tpu.dimension_semantics<arbitrary>], iteration_bounds = array<i64: 1, 1>, scalar_prefetch = 0 : i64, scratch_operands = 1 : i64, tpu.core_type = #tpu.core_type<tc>, window_params = [{transform_indices = @transform_0, window_bounds = array<i64: 8, 128>}, {pipeline_mode = #tpu.pipeline_mode<synchronous>, transform_indices = @transform_1, window_bounds = array<i64: 128, 128>}, {pipeline_mode = #tpu.pipeline_mode<synchronous>, transform_indices = @transform_2, window_bounds = array<i64: 1, 128>}, {pipeline_mode = #tpu.pipeline_mode<synchronous>, transform_indices = @transform_3, window_bounds = array<i64: 128, 128>}, {pipeline_mode = #tpu.pipeline_mode<synchronous>, transform_indices = @transform_4, window_bounds = array<i64: 1, 128>}, {transform_indices = @transform_5, window_bounds = array<i64: 8, 128>}]} {
    %c0_i32 = arith.constant 0 : i32
    %0 = arith.cmpi eq, %arg1, %c0_i32 : i32
    %1 = arith.extui %0 : i1 to i32
    %c0_i32_0 = arith.constant 0 : i32
    %2 = arith.cmpi ne, %1, %c0_i32_0 : i32
    scf.if %2 {
      %c0_16 = arith.constant 0 : index
      %c0_17 = arith.constant 0 : index
      %19 = vector.load %arg6[%c0_16, %c0_17] : memref<1x128xf32, #tpu.memory_space<vmem>>, vector<1x128xf32>
      %20 = vector.shape_cast %19 : vector<1x128xf32> to vector<1x128xf32>
      %21 = vector.broadcast %20 : vector<1x128xf32> to vector<8x128xf32>
      %c0_18 = arith.constant 0 : index
      %c0_19 = arith.constant 0 : index
      %22 = vector.load %arg8[%c0_18, %c0_19] : memref<8x128xf32, #tpu.memory_space<vmem>>, vector<8x128xf32>
      tpu.vector_store %arg8[%c0_18, %c0_19], %21 {strides = array<i32>} : memref<8x128xf32, #tpu.memory_space<vmem>>, vector<8x128xf32>,
    } else {
    }
    %c0 = arith.constant 0 : index
    %c0_1 = arith.constant 0 : index
    %3 = vector.load %arg2[%c0, %c0_1] : memref<8x128xf32, #tpu.memory_space<vmem>>, vector<8x128xf32>
    %c0_2 = arith.constant 0 : index
    %c0_3 = arith.constant 0 : index
    %4 = vector.load %arg3[%c0_2, %c0_3] : memref<128x128xf32, #tpu.memory_space<vmem>>, vector<128x128xf32>
    %cst = arith.constant dense<0.000000e+00> : vector<8x128xf32>
    %5 = tpu.matmul %3, %4, %cst {dimension_numbers = #tpu.dot_dimension_numbers<[1], [0], [0], [1], [0, 0, 1, 1], [], []>} : vector<8x128xf32>, vector<128x128xf32>, vector<8x128xf32> -> vector<8x128xf32>
    %c0_4 = arith.constant 0 : index
    %c0_5 = arith.constant 0 : index
    %6 = vector.load %arg4[%c0_4, %c0_5] : memref<1x128xf32, #tpu.memory_space<vmem>>, vector<1x128xf32>
    %7 = vector.broadcast %6 : vector<1x128xf32> to vector<8x128xf32>
    %8 = arith.addf %5, %7 : vector<8x128xf32>
    %cst_6 = arith.constant 0.000000e+00 : f32
    %9 = vector.broadcast %cst_6 : f32 to vector<8x128xf32>
    %10 = arith.maximumf %8, %9 : vector<8x128xf32>
    %c0_7 = arith.constant 0 : index
    %c0_8 = arith.constant 0 : index
    %11 = vector.load %arg8[%c0_7, %c0_8] : memref<8x128xf32, #tpu.memory_space<vmem>>, vector<8x128xf32>
    %c0_9 = arith.constant 0 : index
    %c0_10 = arith.constant 0 : index
    %12 = vector.load %arg5[%c0_9, %c0_10] : memref<128x128xf32, #tpu.memory_space<vmem>>, vector<128x128xf32>
    %cst_11 = arith.constant dense<0.000000e+00> : vector<8x128xf32>
    %13 = tpu.matmul %10, %12, %cst_11 {dimension_numbers = #tpu.dot_dimension_numbers<[1], [0], [0], [1], [0, 0, 1, 1], [], []>} : vector<8x128xf32>, vector<128x128xf32>, vector<8x128xf32> -> vector<8x128xf32>
    %14 = arith.addf %11, %13 : vector<8x128xf32>
    %c0_12 = arith.constant 0 : index
    %c0_13 = arith.constant 0 : index
    %15 = vector.load %arg8[%c0_12, %c0_13] : memref<8x128xf32, #tpu.memory_space<vmem>>, vector<8x128xf32>
    tpu.vector_store %arg8[%c0_12, %c0_13], %14 {strides = array<i32>} : memref<8x128xf32, #tpu.memory_space<vmem>>, vector<8x128xf32>,
    %c0_i32_14 = arith.constant 0 : i32
    %16 = arith.cmpi eq, %arg1, %c0_i32_14 : i32
    %17 = arith.extui %16 : i1 to i32
    %c0_i32_15 = arith.constant 0 : i32
    %18 = arith.cmpi ne, %17, %c0_i32_15 : i32
    scf.if %18 {
      %c0_16 = arith.constant 0 : index
      %c0_17 = arith.constant 0 : index
      %19 = vector.load %arg8[%c0_16, %c0_17] : memref<8x128xf32, #tpu.memory_space<vmem>>, vector<8x128xf32>
      %c0_18 = arith.constant 0 : index
      %c0_19 = arith.constant 0 : index
      %20 = vector.load %arg7[%c0_18, %c0_19] : memref<8x128xf32, #tpu.memory_space<vmem>>, vector<8x128xf32>
      tpu.vector_store %arg7[%c0_18, %c0_19], %19 {strides = array<i32>} : memref<8x128xf32, #tpu.memory_space<vmem>>, vector<8x128xf32>,
    } else {
    }
    return
  }
  func.func @transform_0(%arg0: i32, %arg1: i32) -> (i32, i32) {
    %c0_i32 = arith.constant 0 : i32
    %c0_i32_0 = arith.constant 0 : i32
    return %arg0, %c0_i32 : i32, i32
  }
  func.func @transform_1(%arg0: i32, %arg1: i32) -> (i32, i32) {
    %c0_i32 = arith.constant 0 : i32
    %c0_i32_0 = arith.constant 0 : i32
    return %c0_i32, %arg1 : i32, i32
  }
  func.func @transform_2(%arg0: i32, %arg1: i32) -> (i32, i32) {
    %c0_i32 = arith.constant 0 : i32
    %c0_i32_0 = arith.constant 0 : i32
    return %c0_i32, %arg1 : i32, i32
  }
  func.func @transform_3(%arg0: i32, %arg1: i32) -> (i32, i32) {
    %c0_i32 = arith.constant 0 : i32
    %c0_i32_0 = arith.constant 0 : i32
    return %arg1, %c0_i32 : i32, i32
  }
  func.func @transform_4(%arg0: i32, %arg1: i32) -> (i32, i32) {
    %c0_i32 = arith.constant 0 : i32
    %c0_i32_0 = arith.constant 0 : i32
    %c0_i32_1 = arith.constant 0 : i32
    return %c0_i32, %c0_i32_0 : i32, i32
  }
  func.func @transform_5(%arg0: i32, %arg1: i32) -> (i32, i32) {
    %c0_i32 = arith.constant 0 : i32
    %c0_i32_0 = arith.constant 0 : i32
    return %arg0, %c0_i32 : i32, i32
  }
}

module attributes {stable_mosaic.version = 11 : i64} {
  func.func @_mlp_kernel(%arg0: i32, %arg1: i32, %arg2: memref<8x128xf32, #tpu.memory_space<vmem>>, %arg3: memref<128x128xf32, #tpu.memory_space<vmem>>, %arg4: memref<1x128xf32, #tpu.memory_space<vmem>>, %arg5: memref<128x128xf32, #tpu.memory_space<vmem>>, %arg6: memref<1x128xf32, #tpu.memory_space<vmem>>, %arg7: memref<8x128xf32, #tpu.memory_space<vmem>>, %arg8: memref<8x128xf32, #tpu.memory_space<vmem>>) attributes {dimension_semantics = [#tpu.dimension_semantics<parallel>, #tpu.dimension_semantics<arbitrary>], iteration_bounds = array<i64: 1, 1>, scalar_prefetch = 0 : i64, scratch_operands = 1 : i64, tpu.core_type = #tpu.core_type<tc>, window_params = [{transform_indices = @transform_0, window_bounds = array<i64: 8, 128>}, {transform_indices = @transform_1, window_bounds = array<i64: 128, 128>}, {transform_indices = @transform_2, window_bounds = array<i64: 1, 128>}, {transform_indices = @transform_3, window_bounds = array<i64: 128, 128>}, {pipeline_mode = #tpu.pipeline_mode<synchronous>, transform_indices = @transform_4, window_bounds = array<i64: 1, 128>}, {transform_indices = @transform_5, window_bounds = array<i64: 8, 128>}]} {
    %c0_i32 = arith.constant 0 : i32
    %0 = arith.cmpi eq, %arg1, %c0_i32 : i32
    %1 = arith.extui %0 : i1 to i32
    %c0_i32_0 = arith.constant 0 : i32
    %2 = arith.cmpi ne, %1, %c0_i32_0 : i32
    scf.if %2 {
      %c0_16 = arith.constant 0 : index
      %c0_17 = arith.constant 0 : index
      %19 = vector.load %arg6[%c0_16, %c0_17] : memref<1x128xf32, #tpu.memory_space<vmem>>, vector<1x128xf32>
      %20 = vector.shape_cast %19 : vector<1x128xf32> to vector<1x128xf32>
      %21 = vector.broadcast %20 : vector<1x128xf32> to vector<8x128xf32>
      %c0_18 = arith.constant 0 : index
      %c0_19 = arith.constant 0 : index
      %22 = vector.load %arg8[%c0_18, %c0_19] : memref<8x128xf32, #tpu.memory_space<vmem>>, vector<8x128xf32>
      tpu.vector_store %arg8[%c0_18, %c0_19], %21 {strides = array<i32>} : memref<8x128xf32, #tpu.memory_space<vmem>>, vector<8x128xf32>,
    } else {
    }
    %c0 = arith.constant 0 : index
    %c0_1 = arith.constant 0 : index
    %3 = vector.load %arg2[%c0, %c0_1] : memref<8x128xf32, #tpu.memory_space<vmem>>, vector<8x128xf32>
    %c0_2 = arith.constant 0 : index
    %c0_3 = arith.constant 0 : index
    %4 = vector.load %arg3[%c0_2, %c0_3] : memref<128x128xf32, #tpu.memory_space<vmem>>, vector<128x128xf32>
    %cst = arith.constant dense<0.000000e+00> : vector<8x128xf32>
    %5 = tpu.matmul %3, %4, %cst {dimension_numbers = #tpu.dot_dimension_numbers<[1], [0], [0], [1], [0, 0, 1, 1], [], []>} : vector<8x128xf32>, vector<128x128xf32>, vector<8x128xf32> -> vector<8x128xf32>
    %c0_4 = arith.constant 0 : index
    %c0_5 = arith.constant 0 : index
    %6 = vector.load %arg4[%c0_4, %c0_5] : memref<1x128xf32, #tpu.memory_space<vmem>>, vector<1x128xf32>
    %7 = vector.broadcast %6 : vector<1x128xf32> to vector<8x128xf32>
    %8 = arith.addf %5, %7 : vector<8x128xf32>
    %cst_6 = arith.constant 0.000000e+00 : f32
    %9 = vector.broadcast %cst_6 : f32 to vector<8x128xf32>
    %10 = arith.maximumf %8, %9 : vector<8x128xf32>
    %c0_7 = arith.constant 0 : index
    %c0_8 = arith.constant 0 : index
    %11 = vector.load %arg8[%c0_7, %c0_8] : memref<8x128xf32, #tpu.memory_space<vmem>>, vector<8x128xf32>
    %c0_9 = arith.constant 0 : index
    %c0_10 = arith.constant 0 : index
    %12 = vector.load %arg5[%c0_9, %c0_10] : memref<128x128xf32, #tpu.memory_space<vmem>>, vector<128x128xf32>
    %cst_11 = arith.constant dense<0.000000e+00> : vector<8x128xf32>
    %13 = tpu.matmul %10, %12, %cst_11 {dimension_numbers = #tpu.dot_dimension_numbers<[1], [0], [0], [1], [0, 0, 1, 1], [], []>} : vector<8x128xf32>, vector<128x128xf32>, vector<8x128xf32> -> vector<8x128xf32>
    %14 = arith.addf %11, %13 : vector<8x128xf32>
    %c0_12 = arith.constant 0 : index
    %c0_13 = arith.constant 0 : index
    %15 = vector.load %arg8[%c0_12, %c0_13] : memref<8x128xf32, #tpu.memory_space<vmem>>, vector<8x128xf32>
    tpu.vector_store %arg8[%c0_12, %c0_13], %14 {strides = array<i32>} : memref<8x128xf32, #tpu.memory_space<vmem>>, vector<8x128xf32>,
    %c0_i32_14 = arith.constant 0 : i32
    %16 = arith.cmpi eq, %arg1, %c0_i32_14 : i32
    %17 = arith.extui %16 : i1 to i32
    %c0_i32_15 = arith.constant 0 : i32
    %18 = arith.cmpi ne, %17, %c0_i32_15 : i32
    scf.if %18 {
      %c0_16 = arith.constant 0 : index
      %c0_17 = arith.constant 0 : index
      %19 = vector.load %arg8[%c0_16, %c0_17] : memref<8x128xf32, #tpu.memory_space<vmem>>, vector<8x128xf32>
      %c0_18 = arith.constant 0 : index
      %c0_19 = arith.constant 0 : index
      %20 = vector.load %arg7[%c0_18, %c0_19] : memref<8x128xf32, #tpu.memory_space<vmem>>, vector<8x128xf32>
      tpu.vector_store %arg7[%c0_18, %c0_19], %19 {strides = array<i32>} : memref<8x128xf32, #tpu.memory_space<vmem>>, vector<8x128xf32>,
    } else {
    }
    return
  }
  func.func @transform_0(%arg0: i32, %arg1: i32) -> (i32, i32) {
    %c0_i32 = arith.constant 0 : i32
    %c0_i32_0 = arith.constant 0 : i32
    return %arg0, %c0_i32 : i32, i32
  }
  func.func @transform_1(%arg0: i32, %arg1: i32) -> (i32, i32) {
    %c0_i32 = arith.constant 0 : i32
    %c0_i32_0 = arith.constant 0 : i32
    return %c0_i32, %arg1 : i32, i32
  }
  func.func @transform_2(%arg0: i32, %arg1: i32) -> (i32, i32) {
    %c0_i32 = arith.constant 0 : i32
    %c0_i32_0 = arith.constant 0 : i32
    return %c0_i32, %arg1 : i32, i32
  }
  func.func @transform_3(%arg0: i32, %arg1: i32) -> (i32, i32) {
    %c0_i32 = arith.constant 0 : i32
    %c0_i32_0 = arith.constant 0 : i32
    return %arg1, %c0_i32 : i32, i32
  }
  func.func @transform_4(%arg0: i32, %arg1: i32) -> (i32, i32) {
    %c0_i32 = arith.constant 0 : i32
    %c0_i32_0 = arith.constant 0 : i32
    %c0_i32_1 = arith.constant 0 : i32
    return %c0_i32, %c0_i32_0 : i32, i32
  }
  func.func @transform_5(%arg0: i32, %arg1: i32) -> (i32, i32) {
    %c0_i32 = arith.constant 0 : i32
    %c0_i32_0 = arith.constant 0 : i32
    return %arg0, %c0_i32 : i32, i32
  }
}

</mosaic_0001>

<bundles_post_ra>
// kernel: tpu_custom_call.1
= control target key start
LH: loop header
LB: loop body
LE: loop exit
PB: predicated region body
PF: predicated region fallthrough
CT: control target
= control target key end

     0   :  { %10 = vsyncpa [#allocation4], 0  ;;  %s567_s0 = inlined_call_operand.hbm [shape: f32[8,128], index: 0, kind: input, shape index: {}]   ;;  %s568_s1 = inlined_call_operand.hbm [shape: f32[128,128], index: 1, kind: input, shape index: {}]   ;;  %s569_s2 = inlined_call_operand.vmem [shape: f32[1,128], index: 2, kind: input, shape index: {}]   ;;  %s570_s3 = inlined_call_operand.hbm [shape: f32[128,128], index: 3, kind: input, shape index: {}]   ;;  %s571_s4 = inlined_call_operand.vmem [shape: f32[1,128], index: 4, kind: input, shape index: {}]   ;;  %s572_s5 = inlined_call_operand.hbm [shape: f32[8,128], index: 5, kind: output, shape index: {}]  }
   0x1   :  { %11 = vsyncpa [#allocation7], 0 }
   0x2   :  { %12 = vsyncpa [#allocation5], 0  ;;  %s477_s18 = smov [#allocation6]  }
   0x3   :  { %s28_s19 = sshll.u32 %s477_s18, 4  ;;  %s29_s19 = int_to_ptr.vmem [resolvable:$true] %s28_s19 }
   0x4   :  { %s399_s20 = scalar_lea.vmem %s29_s19, 2048  ;;  %p404_p1 = scmp.lt.s32.totalorder %s29_s19, %s29_s19 }
   0x5   :  { %p400_p0 = scmp.ne.s32.totalorder %s29_s19, %s399_s20  ;;  %p405_p2 = scmp.lt.s32.totalorder %s399_s20, %s399_s20 }
   0x7   :  { %p406_p3 = por %p405_p2, %p404_p1 }
   0x9   :  { %p407_p4 = pnand %p406_p3, %p400_p0 }
   0xb   :  { %410 = shalt.err (!%p407_p4)
}
   0xc   :  { %s478_s21 = smov 128   ;;  %s479_s22 = smov 8  }
   0xd   :  { %34 = dma.hbm_to_vmem [thread:$0]  %s568_s1, 2048, %s29_s19, [#allocation7], %s478_s21, %s478_s21, %s479_s22  }
   0xe   :  { %s480_s25 = smov [#allocation3]   ;;  %s481_s27 = smov [#allocation8]  }
   0xf   :  { %s19_s26 = sshll.u32 %s480_s25, 4  ;;  %s42_s28 = sshll.u32 %s481_s27, 4  ;;  %s20_s26 = int_to_ptr.vmem [resolvable:$true] %s19_s26  ;;  %s43_s28 = int_to_ptr.vmem [resolvable:$true] %s42_s28 }
  0x10   :  { %s419_s29 = scalar_lea.vmem %s20_s26, 128  ;;  %p424_p6 = scmp.lt.s32.totalorder %s20_s26, %s20_s26 }
  0x11   :  { %p420_p5 = scmp.ne.s32.totalorder %s20_s26, %s419_s29  ;;  %p425_p7 = scmp.lt.s32.totalorder %s419_s29, %s419_s29 }
  0x13   :  { %p426_p8 = por %p425_p7, %p424_p6 }
  0x15   :  { %p427_p9 = pnand %p426_p8, %p420_p5 }
  0x17   :  { %430 = shalt.err (!%p427_p9)
}
  0x18   :  { %22 = dma.hbm_to_vmem [thread:$0]  %s567_s0, 128, %s20_s26, [#allocation4]  }
  0x19   :  { %s439_s7 = scalar_lea.vmem %s43_s28, 2048  ;;  %p444_p11 = scmp.lt.s32.totalorder %s43_s28, %s43_s28 }
  0x1a   :  { %p440_p10 = scmp.ne.s32.totalorder %s43_s28, %s439_s7  ;;  %p445_p12 = scmp.lt.s32.totalorder %s439_s7, %s439_s7 }
  0x1c   :  { %p446_p13 = por %p445_p12, %p444_p11 }
  0x1e   :  { %p447_p0 = pnand %p446_p13, %p440_p10 }
  0x20   :  { %450 = shalt.err (!%p447_p0)
}
  0x21   :  { %48 = dma.hbm_to_vmem [thread:$0]  %s570_s3, 2048, %s43_s28, [#allocation7], %s478_s21, %s478_s21, %s479_s22  }
  0x22   :  { %471 = dma.done.wait [#allocation4], 128  }
  0x23   :  { %472 = vsyncadd [#allocation4], 4294967168 }
  0x24   :  { %473 = dma.done.wait [#allocation7], 4096  }
  0x25   :  { %474 = vsyncadd [#allocation7], 4294963200  ;;  %v482_v0 = vmov 0.0   ;;  %vm483_vm0 = vmmov 0   ;;  %v88_v1 = vld [vmem:[#allocation6 + $0x78] sm:$0xff]  ;;  %v87_v2 = vld [vmem:[#allocation6 + $0x70] sm:$0xff] }
  0x26   :  { %313 = vmatprep.subr.mxu0 %v482_v0  ;;  %345 = vmatprep.mubr.msk.f32.mxu0 %vm483_vm0, %v482_v0  ;;  %v86_v3 = vld [vmem:[#allocation6 + $0x68] sm:$0xff]  ;;  %v85_v4 = vld [vmem:[#allocation6 + $0x60] sm:$0xff]  ;;  %v183_v5 = vld [vmem:[#allocation8 + $0x78] sm:$0xff]  ;;  %s484_s11 = smov [#allocation9]  }
  0x27   :  { %348 = vmatprep.subr.mxu1 %v482_v0  ;;  %380 = vmatprep.mubr.msk.f32.mxu1 %vm483_vm0, %v482_v0  ;;  %v84_v6 = vld [vmem:[#allocation6 + $0x58] sm:$0xff]  ;;  %v182_v7 = vld [vmem:[#allocation8 + $0x70] sm:$0xff]  ;;  %v181_v8 = vld [vmem:[#allocation8 + $0x68] sm:$0xff]  ;;  %s267_s12 = sshll.u32 %s484_s11, 4  ;;  %s268_s12 = int_to_ptr.vmem [resolvable:$true] %s267_s12 }
  0x28   :  { %314 = vmatpush3.msra.mxu0 %v88_v1  ;;  %349 = vmatpush3.msra.mxu1 %v183_v5  ;;  %v83_v9 = vld [vmem:[#allocation6 + $0x50] sm:$0xff]  ;;  %v180_v10 = vld [vmem:[#allocation8 + $0x60] sm:$0xff]  ;;  %v82_v11 = vld [vmem:[#allocation6 + $0x48] sm:$0xff]  ;;  %s451_s13 = scalar_lea.vmem %s268_s12, 128  ;;  %p456_p2 = scmp.lt.s32.totalorder %s268_s12, %s268_s12 }
  0x29   :  { %315 = vmatprep.subr.mxu0 %v482_v0  ;;  %350 = vmatprep.subr.mxu1 %v482_v0  ;;  %v179_v12 = vld [vmem:[#allocation8 + $0x58] sm:$0xff]  ;;  %v81_v13 = vld [vmem:[#allocation6 + $0x40] sm:$0xff]  ;;  %v178_v14 = vld [vmem:[#allocation8 + $0x50] sm:$0xff]  ;;  %p452_p1 = scmp.ne.s32.totalorder %s268_s12, %s451_s13  ;;  %p457_p3 = scmp.lt.s32.totalorder %s451_s13, %s451_s13 }
  0x2a   :  { %316 = vmatpush3.msra.mxu0 %v87_v2  ;;  %351 = vmatpush3.msra.mxu1 %v182_v7  ;;  %v80_v15 = vld [vmem:[#allocation6 + $0x38] sm:$0xff]  ;;  %v177_v16 = vld [vmem:[#allocation8 + $0x48] sm:$0xff]  ;;  %v79_v17 = vld [vmem:[#allocation6 + $0x30] sm:$0xff] }
  0x2b   :  { %317 = vmatprep.subr.mxu0 %v482_v0  ;;  %352 = vmatprep.subr.mxu1 %v482_v0  ;;  %v176_v18 = vld [vmem:[#allocation8 + $0x40] sm:$0xff]  ;;  %v78_v19 = vld [vmem:[#allocation6 + $0x28] sm:$0xff]  ;;  %v175_v20 = vld [vmem:[#allocation8 + $0x38] sm:$0xff]  ;;  %p458_p4 = por %p457_p3, %p456_p2 }
  0x2c   :  { %318 = vmatpush3.msra.mxu0 %v86_v3  ;;  %353 = vmatpush3.msra.mxu1 %v181_v8  ;;  %v77_v21 = vld [vmem:[#allocation6 + $0x20] sm:$0xff]  ;;  %v174_v22 = vld [vmem:[#allocation8 + $0x30] sm:$0xff]  ;;  %v76_v23 = vld [vmem:[#allocation6 + $0x18] sm:$0xff] }
  0x2d   :  { %319 = vmatprep.subr.mxu0 %v482_v0  ;;  %354 = vmatprep.subr.mxu1 %v482_v0  ;;  %v173_v24 = vld [vmem:[#allocation8 + $0x28] sm:$0xff]  ;;  %v75_v25 = vld [vmem:[#allocation6 + $0x10] sm:$0xff]  ;;  %v172_v26 = vld [vmem:[#allocation8 + $0x20] sm:$0xff]  ;;  %p459_p5 = pnand %p458_p4, %p452_p1 }
  0x2e   :  { %320 = vmatpush3.msra.mxu0 %v85_v4  ;;  %355 = vmatpush3.msra.mxu1 %v180_v10  ;;  %v74_v27 = vld [vmem:[#allocation6 + $0x8] sm:$0xff]  ;;  %v171_v28 = vld [vmem:[#allocation8 + $0x18] sm:$0xff]  ;;  %v73_v29 = vld [vmem:[#allocation6] sm:$0xff] }
  0x2f   :  { %321 = vmatprep.subr.mxu0 %v482_v0  ;;  %356 = vmatprep.subr.mxu1 %v482_v0  ;;  %v72_v30 = vld [vmem:[#allocation3] sm:$0xff]  ;;  %v170_v31 = vld [vmem:[#allocation8 + $0x10] sm:$0xff]  ;;  %v169_v32 = vld [vmem:[#allocation8 + $0x8] sm:$0xff] }
  0x30   :  { %322 = vmatpush3.msra.mxu0 %v84_v6  ;;  %357 = vmatpush3.msra.mxu1 %v179_v12  ;;  %v168_v33 = vld [vmem:[#allocation8] sm:$0xff]  ;;  %v278_v34 = vld [vmem:[%s569_s2] ss:$0 sm:$0xff] }
  0x31   :  { %323 = vmatprep.subr.mxu0 %v482_v0  ;;  %358 = vmatprep.subr.mxu1 %v482_v0  ;;  %v277_v39 = vld [vmem:[%s571_s4] ss:$0 sm:$0xff] }
  0x32   :  { %324 = vmatpush3.msra.mxu0 %v83_v9  ;;  %359 = vmatpush3.msra.mxu1 %v178_v14 }
  0x33   :  { %325 = vmatprep.subr.mxu0 %v482_v0  ;;  %360 = vmatprep.subr.mxu1 %v482_v0 }
  0x34   :  { %326 = vmatpush3.msra.mxu0 %v82_v11  ;;  %361 = vmatpush3.msra.mxu1 %v177_v16 }
  0x35   :  { %327 = vmatprep.subr.mxu0 %v482_v0  ;;  %362 = vmatprep.subr.mxu1 %v482_v0 }
  0x36   :  { %328 = vmatpush3.msra.mxu0 %v81_v13  ;;  %363 = vmatpush3.msra.mxu1 %v176_v18 }
  0x37   :  { %329 = vmatprep.subr.mxu0 %v482_v0  ;;  %364 = vmatprep.subr.mxu1 %v482_v0 }
  0x38   :  { %330 = vmatpush3.msra.mxu0 %v80_v15  ;;  %365 = vmatpush3.msra.mxu1 %v175_v20 }
  0x39   :  { %331 = vmatprep.subr.mxu0 %v482_v0  ;;  %366 = vmatprep.subr.mxu1 %v482_v0 }
  0x3a   :  { %332 = vmatpush3.msra.mxu0 %v79_v17  ;;  %367 = vmatpush3.msra.mxu1 %v174_v22 }
  0x3b   :  { %333 = vmatprep.subr.mxu0 %v482_v0  ;;  %368 = vmatprep.subr.mxu1 %v482_v0 }
  0x3c   :  { %334 = vmatpush3.msra.mxu0 %v78_v19  ;;  %369 = vmatpush3.msra.mxu1 %v173_v24 }
  0x3d   :  { %335 = vmatprep.subr.mxu0 %v482_v0  ;;  %370 = vmatprep.subr.mxu1 %v482_v0 }
  0x3e   :  { %336 = vmatpush3.msra.mxu0 %v77_v21  ;;  %371 = vmatpush3.msra.mxu1 %v172_v26 }
  0x3f   :  { %337 = vmatprep.subr.mxu0 %v482_v0  ;;  %372 = vmatprep.subr.mxu1 %v482_v0 }
  0x40   :  { %338 = vmatpush3.msra.mxu0 %v76_v23  ;;  %373 = vmatpush3.msra.mxu1 %v171_v28 }
  0x41   :  { %339 = vmatprep.subr.mxu0 %v482_v0  ;;  %374 = vmatprep.subr.mxu1 %v482_v0 }
  0x42   :  { %340 = vmatpush3.msra.mxu0 %v75_v25  ;;  %375 = vmatpush3.msra.mxu1 %v170_v31 }
  0x43   :  { %341 = vmatprep.subr.mxu0 %v482_v0  ;;  %376 = vmatprep.subr.mxu1 %v482_v0 }
  0x44   :  { %342 = vmatpush3.msra.mxu0 %v74_v27  ;;  %377 = vmatpush3.msra.mxu1 %v169_v32 }
  0x45   :  { %343 = vmatprep.subr.mxu0 %v482_v0  ;;  %378 = vmatprep.subr.mxu1 %v482_v0 }
  0x46   :  { %344 = vmatpush3.msra.mxu0 %v73_v29  ;;  %379 = vmatpush3.msra.mxu1 %v168_v33 }
  0x47   :  { %346 = vmatmul.mubr.f32.vlgmr.msra.gmra.mxu0 %v72_v30 }
 0x107   :  { %v162_v35 = vpop.f32.mrf.mxu0 }
 0x108   :  { %v163_v36 = vadd.f32 %v278_v34, %v162_v35 }
 0x109   :  { %v347_v37 = vpop.f32.mrf.mxu0 }
 0x10a   :  { %v166_v38 = vmax.f32 %v163_v36, 0.0 }
 0x10c   :  { %381 = vmatmul.mubr.f32.vlgmr.msra.gmra.mxu1 %v166_v38 }
 0x1cc   :  { %v250_v40 = vpop.f32.mrf.mxu1 }
 0x1cd   :  { %v254_v41 = vadd.f32 %v277_v39, %v250_v40 }
 0x1ce   :  { %v382_v42 = vpop.f32.mrf.mxu1 }
 0x1cf   :  { %260 = vst [vmem:[#allocation9] sm:$0xff] %v254_v41 }
 0x1d0   :  { %462 = shalt.err (!%p459_p5)
}
 0x1d1   :  { %270 = dma.vmem_to_hbm [thread:$0]  %s268_s12, 128, %s572_s5, [#allocation5]  }
 0x1d2   :  { %475 = dma.done.wait [#allocation5], 128  }
 0x1d3   :  { %476 = vsyncadd [#allocation5], 4294967168 }
 0x1d4   :  { %274 = vsyncpa [#allocation4], 1 }
 0x1d5   :  { %275 = vsyncpa [#allocation7], 1 }
 0x1d6   :  { %276 = vsyncpa [#allocation5], 1 }

// kernel: tpu_custom_call.1
= control target key start
LH: loop header
LB: loop body
LE: loop exit
PB: predicated region body
PF: predicated region fallthrough
CT: control target
= control target key end

     0   :  { %10 = vsyncpa [#allocation4], 0  ;;  %s567_s0 = inlined_call_operand.hbm [shape: f32[8,128], index: 0, kind: input, shape index: {}]   ;;  %s568_s1 = inlined_call_operand.hbm [shape: f32[128,128], index: 1, kind: input, shape index: {}]   ;;  %s569_s2 = inlined_call_operand.vmem [shape: f32[1,128], index: 2, kind: input, shape index: {}]   ;;  %s570_s3 = inlined_call_operand.hbm [shape: f32[128,128], index: 3, kind: input, shape index: {}]   ;;  %s571_s4 = inlined_call_operand.vmem [shape: f32[1,128], index: 4, kind: input, shape index: {}]   ;;  %s572_s5 = inlined_call_operand.hbm [shape: f32[8,128], index: 5, kind: output, shape index: {}]  }
   0x1   :  { %11 = vsyncpa [#allocation7], 0 }
   0x2   :  { %12 = vsyncpa [#allocation5], 0  ;;  %s477_s18 = smov [#allocation6]  }
   0x3   :  { %s28_s19 = sshll.u32 %s477_s18, 4  ;;  %s29_s19 = int_to_ptr.vmem [resolvable:$true] %s28_s19 }
   0x4   :  { %s399_s20 = scalar_lea.vmem %s29_s19, 2048  ;;  %p404_p1 = scmp.lt.s32.totalorder %s29_s19, %s29_s19 }
   0x5   :  { %p400_p0 = scmp.ne.s32.totalorder %s29_s19, %s399_s20  ;;  %p405_p2 = scmp.lt.s32.totalorder %s399_s20, %s399_s20 }
   0x7   :  { %p406_p3 = por %p405_p2, %p404_p1 }
   0x9   :  { %p407_p4 = pnand %p406_p3, %p400_p0 }
   0xb   :  { %410 = shalt.err (!%p407_p4)
}
   0xc   :  { %s478_s21 = smov 128   ;;  %s479_s22 = smov 8  }
   0xd   :  { %34 = dma.hbm_to_vmem [thread:$0]  %s568_s1, 2048, %s29_s19, [#allocation7], %s478_s21, %s478_s21, %s479_s22  }
   0xe   :  { %s480_s25 = smov [#allocation3]   ;;  %s481_s27 = smov [#allocation8]  }
   0xf   :  { %s19_s26 = sshll.u32 %s480_s25, 4  ;;  %s42_s28 = sshll.u32 %s481_s27, 4  ;;  %s20_s26 = int_to_ptr.vmem [resolvable:$true] %s19_s26  ;;  %s43_s28 = int_to_ptr.vmem [resolvable:$true] %s42_s28 }
  0x10   :  { %s419_s29 = scalar_lea.vmem %s20_s26, 128  ;;  %p424_p6 = scmp.lt.s32.totalorder %s20_s26, %s20_s26 }
  0x11   :  { %p420_p5 = scmp.ne.s32.totalorder %s20_s26, %s419_s29  ;;  %p425_p7 = scmp.lt.s32.totalorder %s419_s29, %s419_s29 }
  0x13   :  { %p426_p8 = por %p425_p7, %p424_p6 }
  0x15   :  { %p427_p9 = pnand %p426_p8, %p420_p5 }
  0x17   :  { %430 = shalt.err (!%p427_p9)
}
  0x18   :  { %22 = dma.hbm_to_vmem [thread:$0]  %s567_s0, 128, %s20_s26, [#allocation4]  }
  0x19   :  { %s439_s7 = scalar_lea.vmem %s43_s28, 2048  ;;  %p444_p11 = scmp.lt.s32.totalorder %s43_s28, %s43_s28 }
  0x1a   :  { %p440_p10 = scmp.ne.s32.totalorder %s43_s28, %s439_s7  ;;  %p445_p12 = scmp.lt.s32.totalorder %s439_s7, %s439_s7 }
  0x1c   :  { %p446_p13 = por %p445_p12, %p444_p11 }
  0x1e   :  { %p447_p0 = pnand %p446_p13, %p440_p10 }
  0x20   :  { %450 = shalt.err (!%p447_p0)
}
  0x21   :  { %48 = dma.hbm_to_vmem [thread:$0]  %s570_s3, 2048, %s43_s28, [#allocation7], %s478_s21, %s478_s21, %s479_s22  }
  0x22   :  { %471 = dma.done.wait [#allocation4], 128  }
  0x23   :  { %472 = vsyncadd [#allocation4], 4294967168 }
  0x24   :  { %473 = dma.done.wait [#allocation7], 4096  }
  0x25   :  { %474 = vsyncadd [#allocation7], 4294963200  ;;  %v482_v0 = vmov 0.0   ;;  %vm483_vm0 = vmmov 0   ;;  %v88_v1 = vld [vmem:[#allocation6 + $0x78] sm:$0xff]  ;;  %v87_v2 = vld [vmem:[#allocation6 + $0x70] sm:$0xff] }
  0x26   :  { %313 = vmatprep.subr.mxu0 %v482_v0  ;;  %345 = vmatprep.mubr.msk.f32.mxu0 %vm483_vm0, %v482_v0  ;;  %v86_v3 = vld [vmem:[#allocation6 + $0x68] sm:$0xff]  ;;  %v85_v4 = vld [vmem:[#allocation6 + $0x60] sm:$0xff]  ;;  %v183_v5 = vld [vmem:[#allocation8 + $0x78] sm:$0xff]  ;;  %s484_s11 = smov [#allocation9]  }
  0x27   :  { %348 = vmatprep.subr.mxu1 %v482_v0  ;;  %380 = vmatprep.mubr.msk.f32.mxu1 %vm483_vm0, %v482_v0  ;;  %v84_v6 = vld [vmem:[#allocation6 + $0x58] sm:$0xff]  ;;  %v182_v7 = vld [vmem:[#allocation8 + $0x70] sm:$0xff]  ;;  %v181_v8 = vld [vmem:[#allocation8 + $0x68] sm:$0xff]  ;;  %s267_s12 = sshll.u32 %s484_s11, 4  ;;  %s268_s12 = int_to_ptr.vmem [resolvable:$true] %s267_s12 }
  0x28   :  { %314 = vmatpush3.msra.mxu0 %v88_v1  ;;  %349 = vmatpush3.msra.mxu1 %v183_v5  ;;  %v83_v9 = vld [vmem:[#allocation6 + $0x50] sm:$0xff]  ;;  %v180_v10 = vld [vmem:[#allocation8 + $0x60] sm:$0xff]  ;;  %v82_v11 = vld [vmem:[#allocation6 + $0x48] sm:$0xff]  ;;  %s451_s13 = scalar_lea.vmem %s268_s12, 128  ;;  %p456_p2 = scmp.lt.s32.totalorder %s268_s12, %s268_s12 }
  0x29   :  { %315 = vmatprep.subr.mxu0 %v482_v0  ;;  %350 = vmatprep.subr.mxu1 %v482_v0  ;;  %v179_v12 = vld [vmem:[#allocation8 + $0x58] sm:$0xff]  ;;  %v81_v13 = vld [vmem:[#allocation6 + $0x40] sm:$0xff]  ;;  %v178_v14 = vld [vmem:[#allocation8 + $0x50] sm:$0xff]  ;;  %p452_p1 = scmp.ne.s32.totalorder %s268_s12, %s451_s13  ;;  %p457_p3 = scmp.lt.s32.totalorder %s451_s13, %s451_s13 }
  0x2a   :  { %316 = vmatpush3.msra.mxu0 %v87_v2  ;;  %351 = vmatpush3.msra.mxu1 %v182_v7  ;;  %v80_v15 = vld [vmem:[#allocation6 + $0x38] sm:$0xff]  ;;  %v177_v16 = vld [vmem:[#allocation8 + $0x48] sm:$0xff]  ;;  %v79_v17 = vld [vmem:[#allocation6 + $0x30] sm:$0xff] }
  0x2b   :  { %317 = vmatprep.subr.mxu0 %v482_v0  ;;  %352 = vmatprep.subr.mxu1 %v482_v0  ;;  %v176_v18 = vld [vmem:[#allocation8 + $0x40] sm:$0xff]  ;;  %v78_v19 = vld [vmem:[#allocation6 + $0x28] sm:$0xff]  ;;  %v175_v20 = vld [vmem:[#allocation8 + $0x38] sm:$0xff]  ;;  %p458_p4 = por %p457_p3, %p456_p2 }
  0x2c   :  { %318 = vmatpush3.msra.mxu0 %v86_v3  ;;  %353 = vmatpush3.msra.mxu1 %v181_v8  ;;  %v77_v21 = vld [vmem:[#allocation6 + $0x20] sm:$0xff]  ;;  %v174_v22 = vld [vmem:[#allocation8 + $0x30] sm:$0xff]  ;;  %v76_v23 = vld [vmem:[#allocation6 + $0x18] sm:$0xff] }
  0x2d   :  { %319 = vmatprep.subr.mxu0 %v482_v0  ;;  %354 = vmatprep.subr.mxu1 %v482_v0  ;;  %v173_v24 = vld [vmem:[#allocation8 + $0x28] sm:$0xff]  ;;  %v75_v25 = vld [vmem:[#allocation6 + $0x10] sm:$0xff]  ;;  %v172_v26 = vld [vmem:[#allocation8 + $0x20] sm:$0xff]  ;;  %p459_p5 = pnand %p458_p4, %p452_p1 }
  0x2e   :  { %320 = vmatpush3.msra.mxu0 %v85_v4  ;;  %355 = vmatpush3.msra.mxu1 %v180_v10  ;;  %v74_v27 = vld [vmem:[#allocation6 + $0x8] sm:$0xff]  ;;  %v171_v28 = vld [vmem:[#allocation8 + $0x18] sm:$0xff]  ;;  %v73_v29 = vld [vmem:[#allocation6] sm:$0xff] }
  0x2f   :  { %321 = vmatprep.subr.mxu0 %v482_v0  ;;  %356 = vmatprep.subr.mxu1 %v482_v0  ;;  %v72_v30 = vld [vmem:[#allocation3] sm:$0xff]  ;;  %v170_v31 = vld [vmem:[#allocation8 + $0x10] sm:$0xff]  ;;  %v169_v32 = vld [vmem:[#allocation8 + $0x8] sm:$0xff] }
  0x30   :  { %322 = vmatpush3.msra.mxu0 %v84_v6  ;;  %357 = vmatpush3.msra.mxu1 %v179_v12  ;;  %v168_v33 = vld [vmem:[#allocation8] sm:$0xff]  ;;  %v278_v34 = vld [vmem:[%s569_s2] ss:$0 sm:$0xff] }
  0x31   :  { %323 = vmatprep.subr.mxu0 %v482_v0  ;;  %358 = vmatprep.subr.mxu1 %v482_v0  ;;  %v277_v39 = vld [vmem:[%s571_s4] ss:$0 sm:$0xff] }
  0x32   :  { %324 = vmatpush3.msra.mxu0 %v83_v9  ;;  %359 = vmatpush3.msra.mxu1 %v178_v14 }
  0x33   :  { %325 = vmatprep.subr.mxu0 %v482_v0  ;;  %360 = vmatprep.subr.mxu1 %v482_v0 }
  0x34   :  { %326 = vmatpush3.msra.mxu0 %v82_v11  ;;  %361 = vmatpush3.msra.mxu1 %v177_v16 }
  0x35   :  { %327 = vmatprep.subr.mxu0 %v482_v0  ;;  %362 = vmatprep.subr.mxu1 %v482_v0 }
  0x36   :  { %328 = vmatpush3.msra.mxu0 %v81_v13  ;;  %363 = vmatpush3.msra.mxu1 %v176_v18 }
  0x37   :  { %329 = vmatprep.subr.mxu0 %v482_v0  ;;  %364 = vmatprep.subr.mxu1 %v482_v0 }
  0x38   :  { %330 = vmatpush3.msra.mxu0 %v80_v15  ;;  %365 = vmatpush3.msra.mxu1 %v175_v20 }
  0x39   :  { %331 = vmatprep.subr.mxu0 %v482_v0  ;;  %366 = vmatprep.subr.mxu1 %v482_v0 }
  0x3a   :  { %332 = vmatpush3.msra.mxu0 %v79_v17  ;;  %367 = vmatpush3.msra.mxu1 %v174_v22 }
  0x3b   :  { %333 = vmatprep.subr.mxu0 %v482_v0  ;;  %368 = vmatprep.subr.mxu1 %v482_v0 }
  0x3c   :  { %334 = vmatpush3.msra.mxu0 %v78_v19  ;;  %369 = vmatpush3.msra.mxu1 %v173_v24 }
  0x3d   :  { %335 = vmatprep.subr.mxu0 %v482_v0  ;;  %370 = vmatprep.subr.mxu1 %v482_v0 }
  0x3e   :  { %336 = vmatpush3.msra.mxu0 %v77_v21  ;;  %371 = vmatpush3.msra.mxu1 %v172_v26 }
  0x3f   :  { %337 = vmatprep.subr.mxu0 %v482_v0  ;;  %372 = vmatprep.subr.mxu1 %v482_v0 }
  0x40   :  { %338 = vmatpush3.msra.mxu0 %v76_v23  ;;  %373 = vmatpush3.msra.mxu1 %v171_v28 }
  0x41   :  { %339 = vmatprep.subr.mxu0 %v482_v0  ;;  %374 = vmatprep.subr.mxu1 %v482_v0 }
  0x42   :  { %340 = vmatpush3.msra.mxu0 %v75_v25  ;;  %375 = vmatpush3.msra.mxu1 %v170_v31 }
  0x43   :  { %341 = vmatprep.subr.mxu0 %v482_v0  ;;  %376 = vmatprep.subr.mxu1 %v482_v0 }
  0x44   :  { %342 = vmatpush3.msra.mxu0 %v74_v27  ;;  %377 = vmatpush3.msra.mxu1 %v169_v32 }
  0x45   :  { %343 = vmatprep.subr.mxu0 %v482_v0  ;;  %378 = vmatprep.subr.mxu1 %v482_v0 }
  0x46   :  { %344 = vmatpush3.msra.mxu0 %v73_v29  ;;  %379 = vmatpush3.msra.mxu1 %v168_v33 }
  0x47   :  { %346 = vmatmul.mubr.f32.vlgmr.msra.gmra.mxu0 %v72_v30 }
 0x107   :  { %v162_v35 = vpop.f32.mrf.mxu0 }
 0x108   :  { %v163_v36 = vadd.f32 %v278_v34, %v162_v35 }
 0x109   :  { %v347_v37 = vpop.f32.mrf.mxu0 }
 0x10a   :  { %v166_v38 = vmax.f32 %v163_v36, 0.0 }
 0x10c   :  { %381 = vmatmul.mubr.f32.vlgmr.msra.gmra.mxu1 %v166_v38 }
 0x1cc   :  { %v250_v40 = vpop.f32.mrf.mxu1 }
 0x1cd   :  { %v254_v41 = vadd.f32 %v277_v39, %v250_v40 }
 0x1ce   :  { %v382_v42 = vpop.f32.mrf.mxu1 }
 0x1cf   :  { %260 = vst [vmem:[#allocation9] sm:$0xff] %v254_v41 }
 0x1d0   :  { %462 = shalt.err (!%p459_p5)
}
 0x1d1   :  { %270 = dma.vmem_to_hbm [thread:$0]  %s268_s12, 128, %s572_s5, [#allocation5]  }
 0x1d2   :  { %475 = dma.done.wait [#allocation5], 128  }
 0x1d3   :  { %476 = vsyncadd [#allocation5], 4294967168 }
 0x1d4   :  { %274 = vsyncpa [#allocation4], 1 }
 0x1d5   :  { %275 = vsyncpa [#allocation7], 1 }
 0x1d6   :  { %276 = vsyncpa [#allocation5], 1 }

</bundles_post_ra>
